<compile_context>
chip_gen: v5e
topology: v5e:2x2
jax: 0.10.0
libtpu: 0.0.40
codegen_flags: <defaults>
</compile_context>

<pallas_src>
import functools

import jax
import jax.numpy as jnp
from jax.experimental import pallas as pl
from jax.experimental.pallas import tpu as pltpu

_LANES = 128  # vreg lane width


def _concat_pool_kernel(x_ref, out_ref, max_acc, sum_acc, *,
                        hw, tk, lanewise, mask_tail):
    """One (TR, TK) tile of the (N*C, H*W) slab.

    out_ref : (TR, 2)  -- col 0 = global max, col 1 = global mean (written on
                          the last k step only).
    max_acc / sum_acc : (TR, 128) f32 when `lanewise` else (TR, 1) f32;
                        resident in VMEM scratch across the k (reduction) axis.
    """
    k = pl.program_id(1)
    nk = -(-hw // tk)  # static trip count of the reduction axis

    @pl.when(k == 0)
    def _init():
        max_acc[...] = jnp.full(max_acc.shape, -jnp.inf, dtype=max_acc.dtype)
        sum_acc[...] = jnp.zeros(sum_acc.shape, dtype=sum_acc.dtype)

    def accumulate(tail):
        m = max_acc[...]
        s = sum_acc[...]
        if lanewise:
            # Lane-wise fold: elementwise max/add of whole 128-lane vregs
            # (VPU only). Cast to f32 per chunk -> no full-tile f32 copy.
            n_valid = (hw - (nk - 1) * tk) if tail else tk  # valid cols this step
            for j in range(tk // _LANES):
                lo = j * _LANES
                if lo >= n_valid:
                    break                                   # fully padded chunk
                c = x_ref[:, lo:lo + _LANES].astype(jnp.float32)
                if lo + _LANES > n_valid:                   # straddling chunk
                    valid = (jax.lax.broadcasted_iota(jnp.int32, c.shape, 1)
                             < (n_valid - lo))
                    m = jnp.maximum(m, jnp.where(valid, c, -jnp.inf))
                    s = s + jnp.where(valid, c, 0.0)
                else:
                    m = jnp.maximum(m, c)
                    s = s + c
        else:
            # H*W not a multiple of 128: single full-row block, classic reduce.
            c = x_ref[...].astype(jnp.float32)
            m = jnp.maximum(m, jnp.max(c, axis=-1, keepdims=True))
            s = s + jnp.sum(c, axis=-1, keepdims=True)
        max_acc[...] = m
        sum_acc[...] = s

    if mask_tail:
        # Only the last k step pays the masking cost.
        @pl.when(k < nk - 1)
        def _body():
            accumulate(tail=False)

        @pl.when(k == nk - 1)
        def _tail_body():
            accumulate(tail=True)
    else:
        accumulate(tail=False)

    @pl.when(k == nk - 1)
    def _finalize():
        if lanewise:
            mx = jnp.max(max_acc[...], axis=-1, keepdims=True)     # one XLU reduce
            mean = jnp.sum(sum_acc[...], axis=-1, keepdims=True) * (1.0 / hw)
        else:
            mx = max_acc[...]
            mean = sum_acc[...] * (1.0 / hw)
        out_ref[...] = jnp.concatenate([mx, mean], axis=1).astype(out_ref.dtype)


def _choose_tiles(rows, cols, itemsize):
    """Pick (TR, TK, lanewise, acc_width)."""
    lanewise = (cols % _LANES == 0)

    if lanewise:
        # Prefer tk = full H*W (single contiguous-row DMA, no k axis) when it
        # fits; otherwise 128-aligned chunks (caps the lane-fold unroll too).
        TK_MAX = 16384                       # multiple of 128
        tk = cols if cols <= TK_MAX else TK_MAX
    else:
        # TODO(synk): H*W not a multiple of 128 uses a full-extent row block
        # (always legal) with an in-step reduce; fine for these small shapes.
        tk = cols

    acc_w = _LANES if lanewise else 1

    # Budget ~24 MiB for the hot VMEM state: 2 pipelined input buffers plus the
    # two resident f32 accumulators.  Big steps amortize the ~0.35 us/step grid
    # overhead; 24 MiB keeps >50% headroom on v7x's 64 MiB VMEM/TC and stays
    # far under v5e/v6e's 128 MiB.
    budget = 24 * 1024 * 1024
    per_row = 2 * tk * itemsize + 2 * acc_w * 4
    tr = budget // max(1, per_row)
    tr = max(8, (tr // 8) * 8)

    if tr >= rows:
        if rows >= 16:
            # >=2 row blocks so both v7x TensorCores get work on the
            # "parallel" row axis (harmless on single-TC v5e/v6e).
            tr = ((-(-rows // 2)) + 7) // 8 * 8
            if tr >= rows:
                tr = rows
        else:
            tr = rows                        # full extent is always legal
    return tr, tk, lanewise, acc_w


def adaptive_concat_pool2d(x, size=None):
    """JAX/Pallas equivalent of AdaptiveConcatPool2d(size).forward(x) for size=1."""
    size = size or 1
    assert size == 1, "only global pooling (output size 1) is implemented"

    n, c, h, w = x.shape
    rows, cols = n * c, h * w

    # Pure-metadata flatten in XLA; kernel gets a lane-dense (rows, H*W) slab.
    x2 = x.reshape(rows, cols)

    tr, tk, lanewise, acc_w = _choose_tiles(rows, cols, jnp.dtype(x.dtype).itemsize)
    grid = (pl.cdiv(rows, tr), pl.cdiv(cols, tk))
    mask_tail = lanewise and (cols % tk != 0)

    kernel = functools.partial(
        _concat_pool_kernel, hw=cols, tk=tk, lanewise=lanewise, mask_tail=mask_tail)

    out2 = pl.pallas_call(
        kernel,
        out_shape=jax.ShapeDtypeStruct((rows, 2), x.dtype),
        grid_spec=pltpu.PrefetchScalarGridSpec(
            num_scalar_prefetch=0,
            grid=grid,
            in_specs=[pl.BlockSpec((tr, tk), lambda i, k: (i, k))],
            # Same output block across k -> resident accumulator pattern.
            out_specs=pl.BlockSpec((tr, 2), lambda i, k: (i, 0)),
            scratch_shapes=[
                pltpu.VMEM((tr, acc_w), jnp.float32),   # running lane-wise max
                pltpu.VMEM((tr, acc_w), jnp.float32),   # running lane-wise sum
            ],
        ),
        compiler_params=pltpu.CompilerParams(
            # Row axis sharded across TensorCores; reduction axis is sequential.
            dimension_semantics=("parallel", "arbitrary"),
            # Above the 16/32 MiB scoped defaults; actual use is ~25 MiB so this
            # leaves headroom on every chip (incl. v7x's 64 MiB physical VMEM).
            vmem_limit_bytes=48 << 20,
        ),
    )(x2)

    # out2[:, 0] = max, out2[:, 1] = mean per (n, c) row.
    # -> (N, C, 2) -> (N, 2, C) -> (N, 2C, 1, 1), matching torch.cat([mp, ap], 1).
    out = out2.reshape(n, c, 2).transpose(0, 2, 1).reshape(n, 2 * c, 1, 1)
    return out


def _reference(x):
    return jnp.concatenate(
        [jnp.max(x, axis=(2, 3)), jnp.mean(x, axis=(2, 3))], axis=1
    ).reshape(x.shape[0], 2 * x.shape[1], 1, 1)


if __name__ == "__main__":
    key = jax.random.PRNGKey(0)

    # Primary (module-typical) shape: lane-wise fast path, single k step.
    x = jax.random.normal(key, (2, 4, 16, 16), dtype=jnp.float32)
    out = jax.block_until_ready(adaptive_concat_pool2d(x))
    assert out.shape == (2, 8, 1, 1), out.shape
    assert out.dtype == x.dtype, out.dtype
    assert jnp.allclose(out, _reference(x), atol=1e-5, rtol=1e-5)

    # Odd spatial size: H*W not a multiple of 128 -> full-row fallback path.
    k1, k2 = jax.random.split(key)
    x_odd = jax.random.normal(k1, (2, 3, 7, 9), dtype=jnp.float32)
    out_odd = jax.block_until_ready(adaptive_concat_pool2d(x_odd))
    assert jnp.allclose(out_odd, _reference(x_odd), atol=1e-5, rtol=1e-5)

    # Large spatial size: multi-step reduction axis + gated tail masking.
    x_big = jax.random.normal(k2, (1, 2, 136, 136), dtype=jnp.float32)
    out_big = jax.block_until_ready(adaptive_concat_pool2d(x_big))
    assert jnp.allclose(out_big, _reference(x_big), atol=1e-5, rtol=1e-5)

    print("KERNEL_OK")
</pallas_src>

<mosaic_0001>
module attributes {stable_mosaic.version = 11 : i64} {
  func.func @_concat_pool_kernel(%arg0: i32, %arg1: i32, %arg2: memref<8x256xf32, #tpu.memory_space<vmem>>, %arg3: memref<8x2xf32, #tpu.memory_space<vmem>>, %arg4: memref<8x128xf32, #tpu.memory_space<vmem>>, %arg5: memref<8x128xf32, #tpu.memory_space<vmem>>) attributes {dimension_semantics = [#tpu.dimension_semantics<parallel>, #tpu.dimension_semantics<arbitrary>], iteration_bounds = array<i64: 1, 1>, scalar_prefetch = 0 : i64, scratch_operands = 2 : i64, tpu.core_type = #tpu.core_type<tc>, window_params = [{transform_indices = @transform_0, window_bounds = array<i64: 8, 256>}, {transform_indices = @transform_1, window_bounds = array<i64: 8, 2>}]} {
    %c0_i32 = arith.constant 0 : i32
    %0 = arith.cmpi eq, %arg1, %c0_i32 : i32
    %1 = arith.extui %0 : i1 to i32
    %c0_i32_0 = arith.constant 0 : i32
    %2 = arith.cmpi ne, %1, %c0_i32_0 : i32
    scf.if %2 {
      %cst = arith.constant 0xFF800000 : f32
      %16 = vector.broadcast %cst : f32 to vector<8x128xf32>
      %c0_13 = arith.constant 0 : index
      %c0_14 = arith.constant 0 : index
      %17 = vector.load %arg4[%c0_13, %c0_14] : memref<8x128xf32, #tpu.memory_space<vmem>>, vector<8x128xf32>
      tpu.vector_store %arg4[%c0_13, %c0_14], %16 {strides = array<i32>} : memref<8x128xf32, #tpu.memory_space<vmem>>, vector<8x128xf32>,
      %cst_15 = arith.constant 0.000000e+00 : f32
      %18 = vector.broadcast %cst_15 : f32 to vector<8x128xf32>
      %c0_16 = arith.constant 0 : index
      %c0_17 = arith.constant 0 : index
      %19 = vector.load %arg5[%c0_16, %c0_17] : memref<8x128xf32, #tpu.memory_space<vmem>>, vector<8x128xf32>
      tpu.vector_store %arg5[%c0_16, %c0_17], %18 {strides = array<i32>} : memref<8x128xf32, #tpu.memory_space<vmem>>, vector<8x128xf32>,
    } else {
    }
    %c0 = arith.constant 0 : index
    %c0_1 = arith.constant 0 : index
    %3 = vector.load %arg4[%c0, %c0_1] : memref<8x128xf32, #tpu.memory_space<vmem>>, vector<8x128xf32>
    %c0_2 = arith.constant 0 : index
    %c0_3 = arith.constant 0 : index
    %4 = vector.load %arg5[%c0_2, %c0_3] : memref<8x128xf32, #tpu.memory_space<vmem>>, vector<8x128xf32>
    %c0_4 = arith.constant 0 : index
    %c0_5 = arith.constant 0 : index
    %5 = vector.load %arg2[%c0_4, %c0_5] : memref<8x256xf32, #tpu.memory_space<vmem>>, vector<8x128xf32>
    %6 = arith.maximumf %3, %5 : vector<8x128xf32>
    %7 = arith.addf %4, %5 : vector<8x128xf32>
    %c0_6 = arith.constant 0 : index
    %c128 = arith.constant 128 : index
    %8 = vector.load %arg2[%c0_6, %c128] : memref<8x256xf32, #tpu.memory_space<vmem>>, vector<8x128xf32>
    %9 = arith.maximumf %6, %8 : vector<8x128xf32>
    %10 = arith.addf %7, %8 : vector<8x128xf32>
    %c0_7 = arith.constant 0 : index
    %c0_8 = arith.constant 0 : index
    %11 = vector.load %arg4[%c0_7, %c0_8] : memref<8x128xf32, #tpu.memory_space<vmem>>, vector<8x128xf32>
    tpu.vector_store %arg4[%c0_7, %c0_8], %9 {strides = array<i32>} : memref<8x128xf32, #tpu.memory_space<vmem>>, vector<8x128xf32>,
    %c0_9 = arith.constant 0 : index
    %c0_10 = arith.constant 0 : index
    %12 = vector.load %arg5[%c0_9, %c0_10] : memref<8x128xf32, #tpu.memory_space<vmem>>, vector<8x128xf32>
    tpu.vector_store %arg5[%c0_9, %c0_10], %10 {strides = array<i32>} : memref<8x128xf32, #tpu.memory_space<vmem>>, vector<8x128xf32>,
    %c0_i32_11 = arith.constant 0 : i32
    %13 = arith.cmpi eq, %arg1, %c0_i32_11 : i32
    %14 = arith.extui %13 : i1 to i32
    %c0_i32_12 = arith.constant 0 : i32
    %15 = arith.cmpi ne, %14, %c0_i32_12 : i32
    scf.if %15 {
      %c0_13 = arith.constant 0 : index
      %c0_14 = arith.constant 0 : index
      %16 = vector.load %arg4[%c0_13, %c0_14] : memref<8x128xf32, #tpu.memory_space<vmem>>, vector<8x128xf32>
      %cst = arith.constant dense<0xFF800000> : vector<8xf32>
      %17 = vector.multi_reduction <maximumf>, %16, %cst [1] : vector<8x128xf32> to vector<8xf32>
      %18 = vector.shape_cast %17 : vector<8xf32> to vector<8x1xf32>
      %c0_15 = arith.constant 0 : index
      %c0_16 = arith.constant 0 : index
      %19 = vector.load %arg5[%c0_15, %c0_16] : memref<8x128xf32, #tpu.memory_space<vmem>>, vector<8x128xf32>
      %cst_17 = arith.constant dense<0.000000e+00> : vector<8xf32>
      %20 = vector.multi_reduction <add>, %19, %cst_17 [1] : vector<8x128xf32> to vector<8xf32>
      %21 = vector.shape_cast %20 : vector<8xf32> to vector<8x1xf32>
      %cst_18 = arith.constant 3.906250e-03 : f32
      %22 = vector.broadcast %cst_18 : f32 to vector<8x1xf32>
      %23 = arith.mulf %21, %22 : vector<8x1xf32>
      %24 = tpu.concatenate %18, %23 in 1 : vector<8x1xf32>, vector<8x1xf32> -> vector<8x2xf32>
      %c0_19 = arith.constant 0 : index
      %c0_20 = arith.constant 0 : index
      %25 = vector.load %arg3[%c0_19, %c0_20] : memref<8x2xf32, #tpu.memory_space<vmem>>, vector<8x2xf32>
      tpu.vector_store %arg3[%c0_19, %c0_20], %24 {strides = array<i32>} : memref<8x2xf32, #tpu.memory_space<vmem>>, vector<8x2xf32>,
    } else {
    }
    return
  }
  func.func @transform_0(%arg0: i32, %arg1: i32) -> (i32, i32) {
    %c0_i32 = arith.constant 0 : i32
    return %arg0, %arg1 : i32, i32
  }
  func.func @transform_1(%arg0: i32, %arg1: i32) -> (i32, i32) {
    %c0_i32 = arith.constant 0 : i32
    %c0_i32_0 = arith.constant 0 : i32
    return %arg0, %c0_i32 : i32, i32
  }
}

</mosaic_0001>

<bundles_post_ra>
// kernel: tpu_custom_call.1
= control target key start
LH: loop header
LB: loop body
LE: loop exit
PB: predicated region body
PF: predicated region fallthrough
CT: control target
= control target key end

     0   :  { %6 = vsyncpa [#allocation5], 0  ;;  %s84_s9 = smov [#allocation4]   ;;  %s101_s0 = inlined_call_operand.hbm [shape: f32[8,256], index: 0, kind: input, shape index: {}]   ;;  %s102_s1 = inlined_call_operand.vmem [shape: f32[8,2], index: 1, kind: output, shape index: {}]  }
   0x1   :  { %s12_s8 = sshll.u32 %s101_s0, 4  ;;  %s14_s10 = sshll.u32 %s84_s9, 4  ;;  %s13_s8 = int_to_ptr.hbm [resolvable:$true] %s12_s8  ;;  %s15_s10 = int_to_ptr.vmem [resolvable:$true] %s14_s10 }
   0x2   :  { %17 = dma.hbm_to_vmem [thread:$0]  %s13_s8, 256, %s15_s10, [#allocation5]  }
   0x3   :  { %82 = dma.done.wait [#allocation5], 256  }
   0x4   :  { %83 = vsyncadd [#allocation5], 4294967040  ;;  %v30_v0 = vld [vmem:[#allocation4] sm:$0xff]  ;;  %v33_v1 = vld [vmem:[#allocation4 + $0x8] sm:$0xff]  ;;  %vm48_vm0 = vcmask 7168   ;;  %vm50_vm1 = vcmask 15360  }
   0x5   :  { %v35_v2 = vadd.f32 %v33_v1, %v30_v0  ;;  %v34_v3 = vmax.f32 %v30_v0, %v33_v1 }
   0x7   :  { %45 = vadd.xlane.f32.xlu0 %v35_v2 }
   0xf   :  { %42 = vmax.xlane.f32.xlu0 %v34_v3 }
  0x7a   :  { %v46_v4 = vpop.xlane.xlu0 %45 }
  0x7b   :  { %v47_v5 = vmul.f32 0.00390625, %v46_v4 }
  0x82   :  { %v43_v6 = vpop.xlane.xlu0 %42 }
  0x83   :  { %v49_v7 = vsel %vm48_vm0, %v43_v6, %v47_v5 }
  0x84   :  { %51 = vst.msk [vmem:[%s102_s1] sm:$0xff] %vm50_vm1, %v49_v7 }
  0x85   :  { %56 = vsyncpa [#allocation5], 1 }

</bundles_post_ra>
